<compile_context>
chip_gen: v7x
topology: tpu7x:2x2x1
jax: 0.10.0
libtpu: 0.0.40
codegen_flags: <defaults>
</compile_context>

<pallas_src>
import numpy as np
import jax
import jax.numpy as jnp
from jax import lax
from jax.experimental import pallas as pl
from jax.experimental.pallas import tpu as pltpu


def _leaky_relu(x, negative_slope=0.01):
    return jnp.where(x >= 0, x, negative_slope * x)


def _round_up(n, m):
    return ((n + m - 1) // m) * m


def ffnn_kernel(x_ref, w1_ref, b1_ref, w2_ref, b2_ref, w3_ref, b3_ref, o_ref):
    """One batch tile of the FFNN.

    x_ref  : (TB, D_IN)       f32   streamed per grid step (natural layout)
    w*_ref : (out, in)        bf16  VMEM-resident across the grid
    b*_ref : (out, 1)         f32   VMEM-resident across the grid
    o_ref  : (N_CLASSES, TB)        lane-dense output tile (batch in lanes)
    """
    # In-kernel cast to bf16 (keeps MXU passes cheap; all hidden under x DMA).
    xb = x_ref[...].astype(w1_ref.dtype)                     # (TB, D) bf16

    # fc1: contract D of w1 (last dim) with D of the x tile (last dim)
    # -> (H, TB), batch in lanes.  Mosaic handles the operand transpose in VMEM.
    h = lax.dot_general(w1_ref[...], xb, (((1,), (1,)), ((), ())),
                        preferred_element_type=jnp.float32) + b1_ref[...]
    h = _leaky_relu(h)                                        # (H, TB) f32

    # fc2 (Dropout is identity at inference)
    h = jnp.dot(w2_ref[...], h.astype(w2_ref.dtype),
                preferred_element_type=jnp.float32) + b2_ref[...]
    h = _leaky_relu(h)                                        # (H, TB) f32

    # fc3 -> raw class scores (C, TB)
    z = jnp.dot(w3_ref[...], h.astype(w3_ref.dtype),
                preferred_element_type=jnp.float32) + b3_ref[...]

    # log_softmax over the class (sublane) axis, numerically stable, f32.
    m = jnp.max(z, axis=0, keepdims=True)
    zc = z - m
    lse = jnp.log(jnp.sum(jnp.exp(zc), axis=0, keepdims=True))
    o_ref[...] = (zc - lse).astype(o_ref.dtype)


def _plan_tiles(B, block_b, min_grid):
    """Pick (tile_rows, num_tiles): big tiles, small tail waste, and (when
    multi-tile) at least min_grid steps so v7x can use both TensorCores."""
    if B <= 128:
        return _round_up(B, 8), 1            # tiny batch: one (possibly sub-128) tile
    b128 = _round_up(B, 128)
    nt = pl.cdiv(b128, block_b)
    if nt > 1:
        nt = max(nt, min_grid)
    tb = _round_up(pl.cdiv(b128, nt), 128)
    nt = pl.cdiv(b128, tb)
    return tb, nt


def _vmem_bytes_estimate(tb, d_in, hidden, n_classes):
    f32, bf16 = 4, 2
    stream = 2 * tb * d_in * f32             # x tiles, double-buffered
    outs = 2 * n_classes * tb * f32          # output tiles, double-buffered
    xpose = 2 * tb * d_in * bf16             # in-kernel bf16 copy + transposed operand
    acts = 6 * hidden * tb * f32             # fc1/fc2 activations & temporaries
    return stream + outs + xpose + acts


def ffnn_forward(x, params, *, block_b=32768, min_grid=4,
                 out_dtype=jnp.float32, class_major_output=False,
                 compute_dtype=jnp.bfloat16):
    """x: (B, D_IN) f32 (natural layout); params: (out,in) weights, (out,1) biases."""
    w1, b1, w2, b2, w3, b3 = params
    B, D = x.shape
    H = w1.shape[0]
    C = w3.shape[0]

    tb, nt = _plan_tiles(B, block_b, min_grid)
    Bp = tb * nt                              # padded batch extent (output only)

    # Tiny weights: cast once at the boundary, VMEM-resident across the grid.
    w1c = w1.astype(compute_dtype)
    w2c = w2.astype(compute_dtype)
    w3c = w3.astype(compute_dtype)

    def resident(shape):
        # Same block every grid step -> DMA'd once, stays in VMEM.
        return pl.BlockSpec(shape, lambda i: (0, 0))

    vmem_limit = int(min(max(2 * _vmem_bytes_estimate(tb, D, H, C), 32 << 20),
                         48 << 20))

    out_cmajor = pl.pallas_call(
        ffnn_kernel,
        out_shape=jax.ShapeDtypeStruct((C, Bp), out_dtype),
        grid=(nt,),
        in_specs=[
            pl.BlockSpec((tb, D), lambda i: (i, 0)),      # x streamed, natural layout
            resident(w1c.shape), resident(b1.shape),
            resident(w2c.shape), resident(b2.shape),
            resident(w3c.shape), resident(b3.shape),
        ],
        out_specs=pl.BlockSpec((C, tb), lambda i: (0, i)),  # lane-dense store
        compiler_params=pltpu.CompilerParams(
            dimension_semantics=("parallel",),              # v7x: shard tiles over 2 TCs
            vmem_limit_bytes=vmem_limit,
        ),
    )(x, w1c, b1, w2c, b2, w3c, b3)

    out_cmajor = out_cmajor[:, :B]            # drop padded / garbage batch columns
    if class_major_output:
        return out_cmajor                     # (C, B): consumer skips the transpose
    return out_cmajor.T                       # (B, C) to match the PyTorch module


def init_params(key, d_in, n_classes=3):
    """PyTorch-Linear-style init, stored in PyTorch's native (out, in) layout."""
    hidden_dim = int(np.sqrt(d_in * n_classes))
    dims = [(d_in, hidden_dim), (hidden_dim, hidden_dim), (hidden_dim, n_classes)]
    params = []
    for fan_in, fan_out in dims:
        key, kw, kb = jax.random.split(key, 3)
        bound = 1.0 / np.sqrt(fan_in)
        w = jax.random.uniform(kw, (fan_out, fan_in), jnp.float32, -bound, bound)
        b = jax.random.uniform(kb, (fan_out, 1), jnp.float32, -bound, bound)
        params += [w, b]
    return params


def ffnn_ref(x, params, compute_dtype=jnp.float32):
    """Pure-JAX reference.  compute_dtype=bf16 mirrors the kernel's precision
    choices (bf16 MXU operands, f32 accumulation + f32 elementwise)."""
    w1, b1, w2, b2, w3, b3 = params

    def lin(a, w, b):
        y = jnp.dot(a.astype(compute_dtype), w.T.astype(compute_dtype),
                    preferred_element_type=jnp.float32)
        return y + b[:, 0]

    h = _leaky_relu(lin(x, w1, b1))
    h = _leaky_relu(lin(h, w2, b2))
    z = lin(h, w3, b3)
    return jax.nn.log_softmax(z, axis=1)


if __name__ == "__main__":
    key = jax.random.PRNGKey(0)
    B, D_IN = 8, 48  # n_features=48 -> hidden_dim = int(sqrt(48*3)) = 12
    key, kx = jax.random.split(key)
    x = jax.random.normal(kx, (B, D_IN), jnp.float32)

    params = init_params(key, D_IN, n_classes=3)

    out = jax.block_until_ready(ffnn_forward(x, params))
    assert out.shape == (B, 3)

    # Tight check against a reference with the same bf16 operand rounding.
    ref_bf16 = ffnn_ref(x, params, compute_dtype=jnp.bfloat16)
    np.testing.assert_allclose(np.asarray(out), np.asarray(ref_bf16),
                               rtol=1e-3, atol=1e-3)

    # Loose check against the full-f32 module semantics (bf16 operand error).
    ref_f32 = ffnn_ref(x, params, compute_dtype=jnp.float32)
    np.testing.assert_allclose(np.asarray(out), np.asarray(ref_f32),
                               rtol=1e-1, atol=1e-1)

    # Exercise the multi-tile path with a partial last tile (tb=256, 4 steps).
    key, kx2 = jax.random.split(key)
    B2 = 1000
    x2 = jax.random.normal(kx2, (B2, D_IN), jnp.float32)
    out2 = jax.block_until_ready(ffnn_forward(x2, params, block_b=512, min_grid=4))
    assert out2.shape == (B2, 3)
    ref2 = ffnn_ref(x2, params, compute_dtype=jnp.bfloat16)
    np.testing.assert_allclose(np.asarray(out2), np.asarray(ref2),
                               rtol=1e-3, atol=2e-3)

    print("KERNEL_OK")
</pallas_src>

<mosaic_0001>
module attributes {stable_mosaic.version = 11 : i64} {
  func.func @ffnn_kernel(%arg0: i32, %arg1: memref<8x48xf32, #tpu.memory_space<vmem>>, %arg2: memref<12x48xbf16, #tpu.memory_space<vmem>>, %arg3: memref<12x1xf32, #tpu.memory_space<vmem>>, %arg4: memref<12x12xbf16, #tpu.memory_space<vmem>>, %arg5: memref<12x1xf32, #tpu.memory_space<vmem>>, %arg6: memref<3x12xbf16, #tpu.memory_space<vmem>>, %arg7: memref<3x1xf32, #tpu.memory_space<vmem>>, %arg8: memref<3x8xf32, #tpu.memory_space<vmem>>) attributes {dimension_semantics = [#tpu.dimension_semantics<parallel>], iteration_bounds = array<i64: 1>, scalar_prefetch = 0 : i64, scratch_operands = 0 : i64, tpu.core_type = #tpu.core_type<tc>, window_params = [{transform_indices = @transform_0, window_bounds = array<i64: 8, 48>}, {pipeline_mode = #tpu.pipeline_mode<synchronous>, transform_indices = @transform_1, window_bounds = array<i64: 12, 48>}, {pipeline_mode = #tpu.pipeline_mode<synchronous>, transform_indices = @transform_2, window_bounds = array<i64: 12, 1>}, {pipeline_mode = #tpu.pipeline_mode<synchronous>, transform_indices = @transform_3, window_bounds = array<i64: 12, 12>}, {pipeline_mode = #tpu.pipeline_mode<synchronous>, transform_indices = @transform_4, window_bounds = array<i64: 12, 1>}, {pipeline_mode = #tpu.pipeline_mode<synchronous>, transform_indices = @transform_5, window_bounds = array<i64: 3, 12>}, {pipeline_mode = #tpu.pipeline_mode<synchronous>, transform_indices = @transform_6, window_bounds = array<i64: 3, 1>}, {transform_indices = @transform_7, window_bounds = array<i64: 3, 8>}]} {
    %c0 = arith.constant 0 : index
    %c0_0 = arith.constant 0 : index
    %0 = vector.load %arg1[%c0, %c0_0] : memref<8x48xf32, #tpu.memory_space<vmem>>, vector<8x48xf32>
    %1 = arith.truncf %0 : vector<8x48xf32> to vector<8x48xbf16>
    %c0_1 = arith.constant 0 : index
    %c0_2 = arith.constant 0 : index
    %2 = vector.load %arg2[%c0_1, %c0_2] : memref<12x48xbf16, #tpu.memory_space<vmem>>, vector<12x48xbf16>
    %cst = arith.constant dense<0.000000e+00> : vector<12x8xf32>
    %3 = tpu.matmul %2, %1, %cst {dimension_numbers = #tpu.dot_dimension_numbers<[1], [1], [0], [0], [0, 0, 1, 0], [], []>} : vector<12x48xbf16>, vector<8x48xbf16>, vector<12x8xf32> -> vector<12x8xf32>
    %c0_3 = arith.constant 0 : index
    %c0_4 = arith.constant 0 : index
    %4 = vector.load %arg3[%c0_3, %c0_4] : memref<12x1xf32, #tpu.memory_space<vmem>>, vector<12x1xf32>
    %5 = vector.broadcast %4 : vector<12x1xf32> to vector<12x8xf32>
    %6 = arith.addf %3, %5 : vector<12x8xf32>
    %cst_5 = arith.constant 0.000000e+00 : f32
    %7 = vector.broadcast %cst_5 : f32 to vector<12x8xf32>
    %8 = arith.cmpf oge, %6, %7 : vector<12x8xf32>
    %cst_6 = arith.constant 0.00999999977 : f32
    %9 = vector.broadcast %cst_6 : f32 to vector<12x8xf32>
    %10 = arith.mulf %9, %6 : vector<12x8xf32>
    %11 = arith.select %8, %6, %10 : vector<12x8xi1>, vector<12x8xf32>
    %c0_7 = arith.constant 0 : index
    %c0_8 = arith.constant 0 : index
    %12 = vector.load %arg4[%c0_7, %c0_8] : memref<12x12xbf16, #tpu.memory_space<vmem>>, vector<12x12xbf16>
    %13 = arith.truncf %11 : vector<12x8xf32> to vector<12x8xbf16>
    %cst_9 = arith.constant dense<0.000000e+00> : vector<12x8xf32>
    %14 = tpu.matmul %12, %13, %cst_9 {dimension_numbers = #tpu.dot_dimension_numbers<[1], [0], [0], [1], [0, 0, 1, 1], [], []>} : vector<12x12xbf16>, vector<12x8xbf16>, vector<12x8xf32> -> vector<12x8xf32>
    %c0_10 = arith.constant 0 : index
    %c0_11 = arith.constant 0 : index
    %15 = vector.load %arg5[%c0_10, %c0_11] : memref<12x1xf32, #tpu.memory_space<vmem>>, vector<12x1xf32>
    %16 = vector.broadcast %15 : vector<12x1xf32> to vector<12x8xf32>
    %17 = arith.addf %14, %16 : vector<12x8xf32>
    %cst_12 = arith.constant 0.000000e+00 : f32
    %18 = vector.broadcast %cst_12 : f32 to vector<12x8xf32>
    %19 = arith.cmpf oge, %17, %18 : vector<12x8xf32>
    %cst_13 = arith.constant 0.00999999977 : f32
    %20 = vector.broadcast %cst_13 : f32 to vector<12x8xf32>
    %21 = arith.mulf %20, %17 : vector<12x8xf32>
    %22 = arith.select %19, %17, %21 : vector<12x8xi1>, vector<12x8xf32>
    %c0_14 = arith.constant 0 : index
    %c0_15 = arith.constant 0 : index
    %23 = vector.load %arg6[%c0_14, %c0_15] : memref<3x12xbf16, #tpu.memory_space<vmem>>, vector<3x12xbf16>
    %24 = arith.truncf %22 : vector<12x8xf32> to vector<12x8xbf16>
    %cst_16 = arith.constant dense<0.000000e+00> : vector<3x8xf32>
    %25 = tpu.matmul %23, %24, %cst_16 {dimension_numbers = #tpu.dot_dimension_numbers<[1], [0], [0], [1], [0, 0, 1, 1], [], []>} : vector<3x12xbf16>, vector<12x8xbf16>, vector<3x8xf32> -> vector<3x8xf32>
    %c0_17 = arith.constant 0 : index
    %c0_18 = arith.constant 0 : index
    %26 = vector.load %arg7[%c0_17, %c0_18] : memref<3x1xf32, #tpu.memory_space<vmem>>, vector<3x1xf32>
    %27 = vector.broadcast %26 : vector<3x1xf32> to vector<3x8xf32>
    %28 = arith.addf %25, %27 : vector<3x8xf32>
    %cst_19 = arith.constant dense<0xFF800000> : vector<8xf32>
    %29 = vector.multi_reduction <maximumf>, %28, %cst_19 [0] : vector<3x8xf32> to vector<8xf32>
    %30 = vector.shape_cast %29 : vector<8xf32> to vector<1x8xf32>
    %31 = vector.broadcast %30 : vector<1x8xf32> to vector<3x8xf32>
    %32 = arith.subf %28, %31 : vector<3x8xf32>
    %33 = math.exp %32 : vector<3x8xf32>
    %cst_20 = arith.constant dense<0.000000e+00> : vector<8xf32>
    %34 = vector.multi_reduction <add>, %33, %cst_20 [0] : vector<3x8xf32> to vector<8xf32>
    %35 = vector.shape_cast %34 : vector<8xf32> to vector<1x8xf32>
    %36 = math.log %35 : vector<1x8xf32>
    %37 = vector.broadcast %36 : vector<1x8xf32> to vector<3x8xf32>
    %38 = arith.subf %32, %37 : vector<3x8xf32>
    %c0_21 = arith.constant 0 : index
    %c0_22 = arith.constant 0 : index
    %39 = vector.load %arg8[%c0_21, %c0_22] : memref<3x8xf32, #tpu.memory_space<vmem>>, vector<3x8xf32>
    tpu.vector_store %arg8[%c0_21, %c0_22], %38 {strides = array<i32>} : memref<3x8xf32, #tpu.memory_space<vmem>>, vector<3x8xf32>,
    return
  }
  func.func @transform_0(%arg0: i32) -> (i32, i32) {
    %c0_i32 = arith.constant 0 : i32
    %c0_i32_0 = arith.constant 0 : i32
    return %arg0, %c0_i32 : i32, i32
  }
  func.func @transform_1(%arg0: i32) -> (i32, i32) {
    %c0_i32 = arith.constant 0 : i32
    %c0_i32_0 = arith.constant 0 : i32
    %c0_i32_1 = arith.constant 0 : i32
    return %c0_i32, %c0_i32_0 : i32, i32
  }
  func.func @transform_2(%arg0: i32) -> (i32, i32) {
    %c0_i32 = arith.constant 0 : i32
    %c0_i32_0 = arith.constant 0 : i32
    %c0_i32_1 = arith.constant 0 : i32
    return %c0_i32, %c0_i32_0 : i32, i32
  }
  func.func @transform_3(%arg0: i32) -> (i32, i32) {
    %c0_i32 = arith.constant 0 : i32
    %c0_i32_0 = arith.constant 0 : i32
    %c0_i32_1 = arith.constant 0 : i32
    return %c0_i32, %c0_i32_0 : i32, i32
  }
  func.func @transform_4(%arg0: i32) -> (i32, i32) {
    %c0_i32 = arith.constant 0 : i32
    %c0_i32_0 = arith.constant 0 : i32
    %c0_i32_1 = arith.constant 0 : i32
    return %c0_i32, %c0_i32_0 : i32, i32
  }
  func.func @transform_5(%arg0: i32) -> (i32, i32) {
    %c0_i32 = arith.constant 0 : i32
    %c0_i32_0 = arith.constant 0 : i32
    %c0_i32_1 = arith.constant 0 : i32
    return %c0_i32, %c0_i32_0 : i32, i32
  }
  func.func @transform_6(%arg0: i32) -> (i32, i32) {
    %c0_i32 = arith.constant 0 : i32
    %c0_i32_0 = arith.constant 0 : i32
    %c0_i32_1 = arith.constant 0 : i32
    return %c0_i32, %c0_i32_0 : i32, i32
  }
  func.func @transform_7(%arg0: i32) -> (i32, i32) {
    %c0_i32 = arith.constant 0 : i32
    %c0_i32_0 = arith.constant 0 : i32
    return %c0_i32, %arg0 : i32, i32
  }
}

</mosaic_0001>

<bundles_post_ra>
// kernel: tpu_custom_call.1
= control target key start
LH: loop header
LB: loop body
LE: loop exit
PB: predicated region body
PF: predicated region fallthrough
CT: control target
= control target key end

     0   :  { %vm49_vm0 = vcmask 392192   ;;  %v333_v1 = vmov 0.0   ;;  %vm334_vm1 = vmmov 0   ;;  %v335_v4 = vmov 0   ;;  %s428_s0 = inlined_call_operand.vmem [shape: f32[8,48], index: 0, kind: input, shape index: {}]   ;;  %s429_s1 = inlined_call_operand.vmem [shape: bf16[12,48], index: 1, kind: input, shape index: {}]   ;;  %s430_s2 = inlined_call_operand.vmem [shape: f32[12,1], index: 2, kind: input, shape index: {}]   ;;  %s431_s3 = inlined_call_operand.vmem [shape: bf16[12,12], index: 3, kind: input, shape index: {}]   ;;  %s432_s4 = inlined_call_operand.vmem [shape: f32[12,1], index: 4, kind: input, shape index: {}]   ;;  %s433_s5 = inlined_call_operand.vmem [shape: bf16[3,12], index: 5, kind: input, shape index: {}]   ;;  %s434_s6 = inlined_call_operand.vmem [shape: f32[3,1], index: 6, kind: input, shape index: {}]   ;;  %s435_s7 = inlined_call_operand.hbm [shape: f32[3,8], index: 7, kind: output, shape index: {}]  }
   0x1   :  { %v28_v0 = vld [vmem:[%s428_s0] sm:$0xff]  ;;  %279 = vmatprep.subr.bf16.mxu0 %v333_v1  ;;  %281 = vmatprep.mubr.msk.bf16.mxu0 %vm334_vm1, %v333_v1 }
   0x2   :  { %v29_v2 = vpack.c.bf16 %v28_v0, %v28_v0  ;;  %v32_v3 = vld [vmem:[%s430_s2] sm:$0xff]  ;;  %301 = vset.pattern.permute.xlu0 %v335_v4  ;;  %285 = vmatprep.subr.bf16.mxu1 %v333_v1 }
   0x3   :  { %36 = vperm.xlu0 %301, %v32_v3   ;;  %287 = vmatprep.mubr.msk.bf16.mxu1 %vm334_vm1, %v333_v1 }
   0x4   :  { %v54_v5 = vsel %vm49_vm0, %v29_v2, 0 }
   0x5   :  { %12 = vsyncpa [#allocation3], 0  ;;  %280 = vmatpush3.bf16.xpose.msra.mxu0 %v54_v5  ;;  %v33_v6 = vld [vmem:[%s430_s2 + $0x8] sm:$0xf]  ;;  %302 = vset.pattern.permute.xlu1 %v335_v4  ;;  %v303_v7 = vld [vmem:[%s429_s1] sm:$0x3f]  }
   0x6   :  { %v180_v8 = vld [vmem:[%s434_s6] sm:$0x7]  ;;  %v107_v10 = vld [vmem:[%s432_s4 + $0x8] sm:$0xf]  ;;  %vm127_vm4 = vcmask 1045504   ;;  %vm123_vm5 = vcmask 97280  }
   0x7   :  { %41 = vperm.xlu0 %301, %v33_v6   ;;  %v106_v9 = vld [vmem:[%s432_s4] sm:$0xff]  ;;  %vm232_vm8 = vcmask 59392  }
   0x8   :  { %110 = vperm.xlu1 %302, %v106_v9   ;;  %v304_v25 = vld [vmem:[%s431_s3] sm:$0x3f]  }
   0x9   :  { %v178_v40 = vld [vmem:[%s433_s5] sm:$0x3]  ;;  %s336_s5 = smov [#allocation2]  }
   0xa   :  { %s260_s13 = sshll.u32 %s336_s5, 4  ;;  %s261_s13 = int_to_ptr.vmem [resolvable:$true] %s260_s13 }
   0xb   :  { %183 = vperm.xlu0 %301, %v180_v8   ;;  %s309_s14 = scalar_lea.vmem %s261_s13, 64  ;;  %p314_p1 = scmp.lt.s32.totalorder %s261_s13, %s261_s13 }
   0xc   :  { %282 = vmatmul.mubr.msk.bf16.vlgmr.msra.gmra.mrb[0].mxu0 %vm49_vm0, %v303_v7  ;;  %115 = vperm.xlu1 %302, %v107_v10   ;;  %p310_p0 = scmp.ne.s32.totalorder %s261_s13, %s309_s14  ;;  %p315_p2 = scmp.lt.s32.totalorder %s309_s14, %s309_s14 }
   0xe   :  { %p316_p3 = por %p315_p2, %p314_p1 }
  0x10   :  { %p317_p4 = pnand %p316_p3, %p310_p0 }
  0x82   :  { %v37_v11 = vpop.permute.xlu0 %36 }
  0x86   :  { %v42_v15 = vpop.permute.xlu0 %41 }
  0x87   :  { %v111_v26 = vpop.permute.xlu1 %110 }
  0x8a   :  { %v184_v41 = vpop.permute.xlu0 %183 }
  0x8b   :  { %v116_v30 = vpop.permute.xlu1 %115 }
  0xdf   :  { %v90_v12 = vpop.f32.mrb[0].mxu0 }
  0xe0   :  { %v91_v13 = vadd.f32 %v90_v12, %v37_v11  ;;  %v283_v14 = vpop.f32.mrb[1].mxu0 }
  0xe1   :  { %v93_v16 = vpop.f32.mrb[2].mxu0 }
  0xe2   :  { %v99_v17 = vmul.f32 0.01, %v91_v13  ;;  %v94_v18 = vadd.f32 %v93_v16, %v42_v15  ;;  %v284_v19 = vpop.f32.mrb[3].mxu0  ;;  %vm97_vm2 = vcmp.ge.f32.partialorder %v91_v13, 0.0 }
  0xe4   :  { %vm98_vm3 = vcmp.ge.f32.partialorder %v94_v18, 0.0  ;;  %v100_v20 = vmul.f32 0.01, %v94_v18  ;;  %v101_v21 = vsel %vm97_vm2, %v91_v13, %v99_v17 }
  0xe6   :  { %v102_v22 = vsel %vm98_vm3, %v94_v18, %v100_v20 }
  0xe7   :  { %v105_v23 = vpack.c.bf16 %v102_v22, %v101_v21 }
  0xe9   :  { %v129_v24 = vsel %vm127_vm4, %v105_v23, 0 }
  0xea   :  { %286 = vmatpush3.bf16.msra.mxu1 %v129_v24 }
  0xeb   :  { %291 = vmatprep.subr.bf16.mxu1 %v333_v1 }
  0xed   :  { %288 = vmatmul.mubr.msk.bf16.vlgmr.msra.gmra.mrb[0].mxu1 %vm123_vm5, %v304_v25 }
  0xee   :  { %293 = vmatprep.mubr.msk.bf16.mxu1 %vm334_vm1, %v333_v1 }
 0x1c0   :  { %v165_v27 = vpop.f32.mrb[0].mxu1 }
 0x1c1   :  { %v166_v28 = vadd.f32 %v165_v27, %v111_v26  ;;  %v289_v29 = vpop.f32.mrb[1].mxu1 }
 0x1c2   :  { %v168_v31 = vpop.f32.mrb[2].mxu1 }
 0x1c3   :  { %v174_v32 = vmul.f32 0.01, %v166_v28  ;;  %v169_v33 = vadd.f32 %v168_v31, %v116_v30  ;;  %v290_v34 = vpop.f32.mrb[3].mxu1  ;;  %vm172_vm6 = vcmp.ge.f32.partialorder %v166_v28, 0.0 }
 0x1c5   :  { %vm173_vm7 = vcmp.ge.f32.partialorder %v169_v33, 0.0  ;;  %v175_v35 = vmul.f32 0.01, %v169_v33  ;;  %v176_v36 = vsel %vm172_vm6, %v166_v28, %v174_v32 }
 0x1c7   :  { %v177_v37 = vsel %vm173_vm7, %v169_v33, %v175_v35 }
 0x1c8   :  { %v179_v38 = vpack.c.bf16 %v177_v37, %v176_v36 }
 0x1ca   :  { %v190_v39 = vsel %vm127_vm4, %v179_v38, 0 }
 0x1cb   :  { %292 = vmatpush3.bf16.msra.mxu1 %v190_v39 }
 0x1ce   :  { %294 = vmatmul.mubr.msk.bf16.vlgmr.msra.gmra.mrb[4].mxu1 %vm123_vm5, %v178_v40 }
 0x2a1   :  { %v226_v42 = vpop.f32.mrb[4].mxu1 }
 0x2a2   :  { %v227_v43 = vadd.f32 %v226_v42, %v184_v41  ;;  %v295_v44 = vpop.f32.mrb[5].mxu1 }
 0x2a3   :  { %v229_v45 = vpop.f32.mrb[6].mxu1 }
 0x2a4   :  { %v233_v46 = vsel %vm232_vm8, %v227_v43, -inf  ;;  %v296_v47 = vpop.f32.mrb[7].mxu1 }
 0x2a5   :  { %v234_v48 = vrot.slane %v233_v46, 4 }
 0x2a7   :  { %v235_v49 = vmax.f32 %v233_v46, %v234_v48 }
 0x2a9   :  { %v236_v50 = vrot.slane %v235_v49, 2 }
 0x2ab   :  { %v237_v51 = vmax.f32 %v235_v49, %v236_v50 }
 0x2ad   :  { %v238_v52 = vrot.slane %v237_v51, 1 }
 0x2af   :  { %v239_v53 = vmax.f32 %v237_v51, %v238_v52 }
 0x2b1   :  { %v240_v54 = vsub.f32 %v227_v43, %v239_v53 }
 0x2b3   :  { %v241_v55 = vmul.f32 1.442695, %v240_v54 }
 0x2b5   :  { %305 = vpow2.f32 %v241_v55 }
 0x2bf   :  { %v306_v56 = vpop.eup %305 }
 0x2c0   :  { %v243_v57 = vsel %vm232_vm8, %v306_v56, 0.0 }
 0x2c1   :  { %v244_v58 = vrot.slane %v243_v57, 4 }
 0x2c3   :  { %v245_v59 = vadd.f32 %v244_v58, %v243_v57 }
 0x2c5   :  { %v246_v60 = vrot.slane %v245_v59, 2 }
 0x2c7   :  { %v247_v61 = vadd.f32 %v246_v60, %v245_v59 }
 0x2c9   :  { %v248_v62 = vrot.slane %v247_v61, 1 }
 0x2cb   :  { %v249_v63 = vadd.f32 %v248_v62, %v247_v61 }
 0x2cd   :  { %307 = vlog2.f32 %v249_v63 }
 0x2d7   :  { %v308_v0 = vpop.eup %307 }
 0x2d8   :  { %v251_v1 = vmul.f32 0.6931472, %v308_v0 }
 0x2da   :  { %v252_v2 = vsub.f32 %v240_v54, %v251_v1 }
 0x2dc   :  { %253 = vst.msk [vmem:[#allocation2] sm:$0x7] %vm232_vm8, %v252_v2 }
 0x2dd   :  { %320 = shalt.err (!%p317_p4)
}
 0x2de   :  { %s321_s17 = scalar_lea.hbm %s435_s7, 64 }
 0x2df   :  { %p322_p5 = scmp.ne.s32.totalorder %s435_s7, %s321_s17  ;;  %p325_p6 = scmp.lt.u32.totalorder %s321_s17, %s435_s7 }
 0x2e1   :  { %p327_p7 = pnand %p325_p6, %p322_p5 }
 0x2e3   :  { %330 = shalt.err (!%p327_p7)
}
 0x2e4   :  { %263 = dma.vmem_to_hbm [thread:$0]  %s261_s13, 64, %s435_s7, [#allocation3]  }
 0x2e5   :  { %331 = dma.done.wait [#allocation3], 64  }
 0x2e6   :  { %332 = vsyncadd [#allocation3], 4294967232 }
 0x2e7   :  { %267 = vsyncpa [#allocation3], 1 }

</bundles_post_ra>
